<compile_context>
chip_gen: v7x
topology: tpu7x:2x2x1
jax: 0.10.0
libtpu: 0.0.40
codegen_flags: <defaults>
</compile_context>

<pallas_src>
import jax
import jax.numpy as jnp
from jax import lax
from jax.experimental import pallas as pl
from jax.experimental.pallas import tpu as pltpu


def ann_kernel(x_ref, w1_ref, b1_ref, w2_ref, b2_ref, o_ref):
    """Fused fc1 -> sigmoid -> fc3 -> softmax(2-class) on one batch tile."""
    # fc1 on the MXU, f32 accumulation (operands may be bf16, pre-cast in wrapper).
    h = jnp.dot(x_ref[...], w1_ref[...], preferred_element_type=jnp.float32)
    h = h + b1_ref[...]                                  # [TB, 400]
    # Keep the sigmoid epilogue in f32 (v5e VPU/EUP has no bf16).
    h = jax.nn.sigmoid(h)
    # fc3 on the MXU.  Cast h to the weight dtype (no-op when weights are f32).
    logits = jnp.dot(h.astype(w2_ref.dtype), w2_ref[...],
                     preferred_element_type=jnp.float32)
    logits = logits + b2_ref[...]                        # [TB, 2] f32
    # 2-class softmax == sigmoid of the logit difference (numerically stable);
    # avoids cross-lane max/sum reductions and a second exp on a 2-lane tile.
    d = logits[:, 1:2] - logits[:, 0:1]                  # [TB, 1]
    p1 = jax.nn.sigmoid(d)
    p0 = 1.0 - p1
    # Scatter (p0, p1) into the (possibly lane-padded) output block.
    tb, width = o_ref.shape
    col = lax.broadcasted_iota(jnp.int32, (tb, width), 1)
    out = jnp.where(col == 0, p0, jnp.where(col == 1, p1, 0.0))
    o_ref[...] = out.astype(o_ref.dtype)


def ann_forward(x, w1, b1, w2, b2, *, tile_b=512, use_bf16=False, out_lanes=128):
    """Forward pass of the ANN module.  x: [B, 20] -> probs: [B, 2]."""
    B, F = x.shape
    H = w1.shape[1]
    C = w2.shape[1]

    if use_bf16:
        # bf16 MXU operands (f32 accumulation); biases / epilogue stay f32.
        x = x.astype(jnp.bfloat16)
        w1 = w1.astype(jnp.bfloat16)
        w2 = w2.astype(jnp.bfloat16)

    if B <= tile_b:
        # Tiny batch: a single un-gridded call — overhead bound, tiling only hurts.
        return pl.pallas_call(
            ann_kernel,
            out_shape=jax.ShapeDtypeStruct((B, C), jnp.float32),
            in_specs=[pl.BlockSpec(memory_space=pltpu.VMEM)] * 5,
            out_specs=pl.BlockSpec(memory_space=pltpu.VMEM),
        )(x, w1, b1, w2, b2)

    # Large batch: grid over batch only; weights/biases resident in VMEM.
    b_pad = pl.cdiv(B, tile_b) * tile_b
    if b_pad != B:
        x = jnp.pad(x, ((0, b_pad - B), (0, 0)))
    grid = (b_pad // tile_b,)

    out = pl.pallas_call(
        ann_kernel,
        out_shape=jax.ShapeDtypeStruct((b_pad, out_lanes), jnp.float32),
        grid=grid,
        in_specs=[
            pl.BlockSpec((tile_b, F), lambda i: (i, 0)),   # x: batch tiles
            pl.BlockSpec((F, H), lambda i: (0, 0)),        # w1 resident
            pl.BlockSpec((1, H), lambda i: (0, 0)),        # b1 resident
            pl.BlockSpec((H, C), lambda i: (0, 0)),        # w2 resident
            pl.BlockSpec((1, C), lambda i: (0, 0)),        # b2 resident
        ],
        out_specs=pl.BlockSpec((tile_b, out_lanes), lambda i: (i, 0)),
        compiler_params=pltpu.CompilerParams(
            dimension_semantics=("parallel",),   # shard batch across v7x's 2 TCs
        ),
    )(x, w1, b1, w2, b2)
    return out[:B, :C]


def init_params(key):
    # Deterministic init mimicking PyTorch Linear default (uniform +- 1/sqrt(fan_in)).
    k1, k2, k3, k4 = jax.random.split(key, 4)
    lim1 = 1.0 / jnp.sqrt(20.0)
    lim2 = 1.0 / jnp.sqrt(400.0)
    # Stored already transposed to [in, out] so the kernel does x @ W.
    w1 = jax.random.uniform(k1, (20, 400), jnp.float32, -lim1, lim1)
    b1 = jax.random.uniform(k2, (1, 400), jnp.float32, -lim1, lim1)
    w2 = jax.random.uniform(k3, (400, 2), jnp.float32, -lim2, lim2)
    b2 = jax.random.uniform(k4, (1, 2), jnp.float32, -lim2, lim2)
    return w1, b1, w2, b2


if __name__ == "__main__":
    key = jax.random.PRNGKey(0)
    kx, kp, kb = jax.random.split(key, 3)
    w1, b1, w2, b2 = init_params(kp)

    def reference(xx):
        h = jax.nn.sigmoid(xx @ w1 + b1)
        return jax.nn.softmax(h @ w2 + b2, axis=1)

    # 1) Tiny batch (typical use of this module): single un-gridded call.
    B_small = 8
    x_small = jax.random.normal(kx, (B_small, 20), jnp.float32)
    out_small = ann_forward(x_small, w1, b1, w2, b2)
    jax.block_until_ready(out_small)
    assert out_small.shape == (B_small, 2)
    assert jnp.allclose(out_small, reference(x_small), atol=1e-5, rtol=1e-5)
    assert jnp.allclose(jnp.sum(out_small, axis=1), 1.0, atol=1e-5)

    # 2) Batched path: batch grid, weights resident, lane-dense padded output.
    B_big = 1000   # deliberately not a multiple of tile_b (exercises padding path)
    x_big = jax.random.normal(kb, (B_big, 20), jnp.float32)
    out_big = ann_forward(x_big, w1, b1, w2, b2, tile_b=256)
    jax.block_until_ready(out_big)
    assert out_big.shape == (B_big, 2)
    assert jnp.allclose(out_big, reference(x_big), atol=1e-5, rtol=1e-5)
    assert jnp.allclose(jnp.sum(out_big, axis=1), 1.0, atol=1e-5)

    # 3) bf16 matmul operands (v6e/v7x MXU fast path), f32 accumulate/epilogue.
    out_bf16 = ann_forward(x_big, w1, b1, w2, b2, tile_b=256, use_bf16=True)
    jax.block_until_ready(out_bf16)
    assert out_bf16.shape == (B_big, 2)
    assert jnp.allclose(out_bf16, reference(x_big), atol=5e-2)
    assert jnp.allclose(jnp.sum(out_bf16, axis=1), 1.0, atol=1e-3)

    print("KERNEL_OK")
</pallas_src>

<mosaic_0001>
module attributes {stable_mosaic.version = 11 : i64} {
  func.func @ann_kernel(%arg0: memref<8x20xf32, #tpu.memory_space<vmem>>, %arg1: memref<20x400xf32, #tpu.memory_space<vmem>>, %arg2: memref<1x400xf32, #tpu.memory_space<vmem>>, %arg3: memref<400x2xf32, #tpu.memory_space<vmem>>, %arg4: memref<1x2xf32, #tpu.memory_space<vmem>>, %arg5: memref<8x2xf32, #tpu.memory_space<vmem>>) attributes {dimension_semantics = [], scalar_prefetch = 0 : i64, scratch_operands = 0 : i64, tpu.core_type = #tpu.core_type<tc>} {
    %c0 = arith.constant 0 : index
    %c0_0 = arith.constant 0 : index
    %0 = vector.load %arg0[%c0, %c0_0] : memref<8x20xf32, #tpu.memory_space<vmem>>, vector<8x20xf32>
    %c0_1 = arith.constant 0 : index
    %c0_2 = arith.constant 0 : index
    %1 = vector.load %arg1[%c0_1, %c0_2] : memref<20x400xf32, #tpu.memory_space<vmem>>, vector<20x400xf32>
    %cst = arith.constant dense<0.000000e+00> : vector<8x400xf32>
    %2 = tpu.matmul %0, %1, %cst {dimension_numbers = #tpu.dot_dimension_numbers<[1], [0], [0], [1], [0, 0, 1, 1], [], []>} : vector<8x20xf32>, vector<20x400xf32>, vector<8x400xf32> -> vector<8x400xf32>
    %c0_3 = arith.constant 0 : index
    %c0_4 = arith.constant 0 : index
    %3 = vector.load %arg2[%c0_3, %c0_4] : memref<1x400xf32, #tpu.memory_space<vmem>>, vector<1x400xf32>
    %4 = vector.broadcast %3 : vector<1x400xf32> to vector<8x400xf32>
    %5 = arith.addf %2, %4 : vector<8x400xf32>
    %6 = arith.negf %5 : vector<8x400xf32>
    %7 = math.exp %6 : vector<8x400xf32>
    %cst_5 = arith.constant 1.000000e+00 : f32
    %8 = vector.broadcast %cst_5 : f32 to vector<8x400xf32>
    %9 = arith.addf %8, %7 : vector<8x400xf32>
    %10 = arith.divf %8, %9 : vector<8x400xf32>
    %c0_6 = arith.constant 0 : index
    %c0_7 = arith.constant 0 : index
    %11 = vector.load %arg3[%c0_6, %c0_7] : memref<400x2xf32, #tpu.memory_space<vmem>>, vector<400x2xf32>
    %cst_8 = arith.constant dense<0.000000e+00> : vector<8x2xf32>
    %12 = tpu.matmul %10, %11, %cst_8 {dimension_numbers = #tpu.dot_dimension_numbers<[1], [0], [0], [1], [0, 0, 1, 1], [], []>} : vector<8x400xf32>, vector<400x2xf32>, vector<8x2xf32> -> vector<8x2xf32>
    %c0_9 = arith.constant 0 : index
    %c0_10 = arith.constant 0 : index
    %13 = vector.load %arg4[%c0_9, %c0_10] : memref<1x2xf32, #tpu.memory_space<vmem>>, vector<1x2xf32>
    %14 = vector.broadcast %13 : vector<1x2xf32> to vector<8x2xf32>
    %15 = arith.addf %12, %14 : vector<8x2xf32>
    %16 = vector.extract_strided_slice %15 {offsets = [0, 1], sizes = [8, 1], strides = [1, 1]} : vector<8x2xf32> to vector<8x1xf32>
    %17 = vector.extract_strided_slice %15 {offsets = [0, 0], sizes = [8, 1], strides = [1, 1]} : vector<8x2xf32> to vector<8x1xf32>
    %18 = arith.subf %16, %17 : vector<8x1xf32>
    %19 = arith.negf %18 : vector<8x1xf32>
    %20 = math.exp %19 : vector<8x1xf32>
    %cst_11 = arith.constant 1.000000e+00 : f32
    %21 = vector.broadcast %cst_11 : f32 to vector<8x1xf32>
    %22 = arith.addf %21, %20 : vector<8x1xf32>
    %23 = arith.divf %21, %22 : vector<8x1xf32>
    %cst_12 = arith.constant 1.000000e+00 : f32
    %24 = vector.broadcast %cst_12 : f32 to vector<8x1xf32>
    %25 = arith.subf %24, %23 : vector<8x1xf32>
    %26 = tpu.iota {dimensions = array<i32: 1>} : vector<8x2xi32>
    %c0_i32 = arith.constant 0 : i32
    %27 = vector.broadcast %c0_i32 : i32 to vector<8x2xi32>
    %28 = arith.cmpi eq, %26, %27 : vector<8x2xi32>
    %c1_i32 = arith.constant 1 : i32
    %29 = vector.broadcast %c1_i32 : i32 to vector<8x2xi32>
    %30 = arith.cmpi eq, %26, %29 : vector<8x2xi32>
    %cst_13 = arith.constant 0.000000e+00 : f32
    %31 = vector.shape_cast %23 : vector<8x1xf32> to vector<8x1xf32>
    %32 = vector.broadcast %31 : vector<8x1xf32> to vector<8x2xf32>
    %33 = vector.broadcast %cst_13 : f32 to vector<8x2xf32>
    %34 = arith.select %30, %32, %33 : vector<8x2xi1>, vector<8x2xf32>
    %35 = vector.shape_cast %25 : vector<8x1xf32> to vector<8x1xf32>
    %36 = vector.broadcast %35 : vector<8x1xf32> to vector<8x2xf32>
    %37 = arith.select %28, %36, %34 : vector<8x2xi1>, vector<8x2xf32>
    %c0_14 = arith.constant 0 : index
    %c0_15 = arith.constant 0 : index
    %38 = vector.load %arg5[%c0_14, %c0_15] : memref<8x2xf32, #tpu.memory_space<vmem>>, vector<8x2xf32>
    tpu.vector_store %arg5[%c0_14, %c0_15], %37 {strides = array<i32>} : memref<8x2xf32, #tpu.memory_space<vmem>>, vector<8x2xf32>,
    return
  }
}

</mosaic_0001>

<bundles_post_ra>
// kernel: tpu_custom_call.1
= control target key start
LH: loop header
LB: loop body
LE: loop exit
PB: predicated region body
PF: predicated region fallthrough
CT: control target
= control target key end

     0   :  { %v614_v3 = vmov 0.0   ;;  %vm59_vm0 = vcmask 1043456   ;;  %vm55_vm1 = vcmask 162816   ;;  %v615_v24 = vmov 0.0|0.0   ;;  %s616_s13 = smov 1   ;;  %s861_s1 = inlined_call_operand.vmem [shape: f32[20,400], index: 1, kind: input, shape index: {}]   ;;  %s862_s3 = inlined_call_operand.vmem [shape: f32[400,2], index: 3, kind: input, shape index: {}]   ;;  %s863_s0 = inlined_call_operand.vmem [shape: f32[8,20], index: 0, kind: input, shape index: {}]   ;;  %s864_s2 = inlined_call_operand.vmem [shape: f32[1,400], index: 2, kind: input, shape index: {}]   ;;  %s865_s4 = inlined_call_operand.vmem [shape: f32[1,2], index: 4, kind: input, shape index: {}]   ;;  %s866_s5 = inlined_call_operand.vmem [shape: f32[8,2], index: 5, kind: output, shape index: {}]  }
   0x1   :  { %v22_v0 = vld [vmem:[%s861_s1 + $0x8] sm:$0xff]  ;;  %v21_v2 = vld [vmem:[%s861_s1] sm:$0xff]  ;;  %136 = vmatprep.mubr.f32.mxu0 %v614_v3  ;;  %207 = vmatprep.mubr.f32.mxu1 %v614_v3  ;;  %v24_v6 = vld [vmem:[%s861_s1 + $0x18] sm:$0xff]  ;;  %vm295_vm2 = vcmask 130048   ;;  %vm467_vm5 = vcmask 15360  }
   0x2   :  { %v26_v1 = vld [vmem:[%s861_s1 + $0x28] sm:$0xff]  ;;  %v25_v5 = vld [vmem:[%s861_s1 + $0x20] sm:$0xff]  ;;  %v28_v7 = vld [vmem:[%s861_s1 + $0x38] sm:$0xff] }
   0x3   :  { %v521_v4 = vpack.c.bf16 %v26_v1, %v22_v0  ;;  %v523_v8 = vpack.c.bf16 %v25_v5, %v21_v2  ;;  %v525_v9 = vpack.c.bf16 %v28_v7, %v24_v6  ;;  %v23_v10 = vld [vmem:[%s861_s1 + $0x10] sm:$0xff]  ;;  %v30_v12 = vld [vmem:[%s861_s1 + $0x48] sm:$0xf]  ;;  %v32_v14 = vld [vmem:[%s861_s1 + $0x58] sm:$0xf] }
   0x4   :  { %v27_v11 = vld [vmem:[%s861_s1 + $0x30] sm:$0xff]  ;;  %v270_v15 = vld [vmem:[%s862_s3 + $0x100] sm:$0xff]  ;;  %v271_v16 = vld [vmem:[%s862_s3 + $0x108] sm:$0xff] }
   0x5   :  { %522 = vmatprep.subr.bf16.mxu0 %v521_v4  ;;  %v527_v13 = vpack.c.bf16 %v27_v11, %v23_v10  ;;  %526 = vmatprep.subr.bf16.mxu1 %v525_v9  ;;  %v29_v17 = vld [vmem:[%s861_s1 + $0x40] sm:$0xf]  ;;  %v255_v19 = vld [vmem:[%s862_s3 + $0x88] sm:$0xff]  ;;  %v31_v21 = vld [vmem:[%s861_s1 + $0x50] sm:$0xf]  ;;  %v562_v22 = vpack.c.bf16 %v271_v16, %v270_v15 }
   0x6   :  { %524 = vmatpush1.bf16.msra.mxu0 %v523_v8  ;;  %v254_v18 = vld [vmem:[%s862_s3 + $0x80] sm:$0xff]  ;;  %v239_v26 = vld [vmem:[%s862_s3 + $0x8] sm:$0xff]  ;;  %v272_v28 = vld [vmem:[%s862_s3 + $0x110] sm:$0xff] }
   0x7   :  { %528 = vmatpush1.bf16.msra.mxu1 %v527_v13  ;;  %473 = vmatprep.subr.msk.mxu0 %vm59_vm0, %v30_v12  ;;  %v20_v20 = vld [vmem:[%s863_s0] sm:$0xff]  ;;  %v529_v23 = vpack.c.bf16 %v255_v19, %v254_v18  ;;  %v273_v29 = vld [vmem:[%s862_s3 + $0x118] sm:$0xff]  ;;  %v256_v31 = vld [vmem:[%s862_s3 + $0x90] sm:$0xff] }
   0x8   :  { %476 = vmatprep.subr.msk.mxu1 %vm59_vm0, %v32_v14  ;;  %v238_v25 = vld [vmem:[%s862_s3] sm:$0xff]  ;;  %v565_v30 = vpack.c.bf16 %v273_v29, %v272_v28  ;;  %v257_v32 = vld [vmem:[%s862_s3 + $0x98] sm:$0xff]  ;;  %v240_v34 = vld [vmem:[%s862_s3 + $0x10] sm:$0xff] }
   0x9   :  { %v531_v27 = vpack.c.bf16 %v239_v26, %v238_v25  ;;  %v533_v33 = vpack.c.bf16 %v257_v32, %v256_v31  ;;  %v241_v35 = vld [vmem:[%s862_s3 + $0x18] sm:$0xff]  ;;  %v274_v37 = vld [vmem:[%s862_s3 + $0x120] sm:$0xff]  ;;  %v275_v38 = vld [vmem:[%s862_s3 + $0x128] sm:$0xff]  ;;  %v35_v31 = vlaneseq }
   0xa   :  { %474 = vmatpush1.msk.msra.mxu0 %vm59_vm0, %v29_v17  ;;  %v535_v36 = vpack.c.bf16 %v241_v35, %v240_v34  ;;  %v568_v39 = vpack.c.bf16 %v275_v38, %v274_v37  ;;  %v258_v40 = vld [vmem:[%s862_s3 + $0xa0] sm:$0xff]  ;;  %v259_v41 = vld [vmem:[%s862_s3 + $0xa8] sm:$0xff]  ;;  %v276_v46 = vld [vmem:[%s862_s3 + $0x130] sm:$0xff] }
   0xb   :  { %475 = vmatmul.mubr.msk.f32.vlgmr.msra.gmra.mrb[0].mxu0 %vm55_vm1, %v20_v20  ;;  %477 = vmatpush1.msk.msra.mxu1 %vm59_vm0, %v31_v21  ;;  %v537_v42 = vpack.c.bf16 %v259_v41, %v258_v40  ;;  %v242_v43 = vld [vmem:[%s862_s3 + $0x20] sm:$0xff]  ;;  %v243_v44 = vld [vmem:[%s862_s3 + $0x28] sm:$0xff]  ;;  %v277_v47 = vld [vmem:[%s862_s3 + $0x138] sm:$0xff]  ;;  %v36_v32 = vshrl.u32 %v35_v31, 7 }
   0xc   :  { %478 = vmatmul.mubr.msk.f32.vlgmr.msra.gmra.mrb[0].mxu1 %vm55_vm1, %v20_v20  ;;  %561 = vmatprep.subr.bf16.mxu1 %v615_v24  ;;  %v539_v45 = vpack.c.bf16 %v243_v44, %v242_v43  ;;  %v571_v48 = vpack.c.bf16 %v277_v47, %v276_v46  ;;  %v260_v49 = vld [vmem:[%s862_s3 + $0xb0] sm:$0xff]  ;;  %v261_v50 = vld [vmem:[%s862_s3 + $0xb8] sm:$0xff]  ;;  %v278_v55 = vld [vmem:[%s862_s3 + $0x140] sm:$0xff] }
   0xd   :  { %563 = vmatpush1.bf16.msra.mxu1 %v562_v22  ;;  %530 = vmatprep.subr.bf16.mxu0 %v529_v23  ;;  %v541_v51 = vpack.c.bf16 %v261_v50, %v260_v49  ;;  %v244_v52 = vld [vmem:[%s862_s3 + $0x30] sm:$0xff]  ;;  %v245_v53 = vld [vmem:[%s862_s3 + $0x38] sm:$0xff]  ;;  %v279_v56 = vld [vmem:[%s862_s3 + $0x148] sm:$0xff]  ;;  %v45_v35 = vsub.s32 2, %v36_v32 }
   0xe   :  { %564 = vmatprep.subr.bf16.mxu1 %v615_v24  ;;  %532 = vmatpush3.bf16.msra.mxu0 %v531_v27  ;;  %v543_v54 = vpack.c.bf16 %v245_v53, %v244_v52  ;;  %v574_v57 = vpack.c.bf16 %v279_v56, %v278_v55  ;;  %v262_v58 = vld [vmem:[%s862_s3 + $0xc0] sm:$0xff]  ;;  %v263_v59 = vld [vmem:[%s862_s3 + $0xc8] sm:$0xff]  ;;  %v280_v0 = vld [vmem:[%s862_s3 + $0x150] sm:$0xff] }
   0xf   :  { %534 = vmatprep.subr.bf16.mxu0 %v533_v33  ;;  %v545_v60 = vpack.c.bf16 %v263_v59, %v262_v58  ;;  %v246_v61 = vld [vmem:[%s862_s3 + $0x40] sm:$0xff]  ;;  %v247_v62 = vld [vmem:[%s862_s3 + $0x48] sm:$0xff]  ;;  %v281_v1 = vld [vmem:[%s862_s3 + $0x158] sm:$0xff]  ;;  %v37_v33 = vsub.s32 0, %v36_v32 }
  0x10   :  { %v547_v63 = vpack.c.bf16 %v247_v62, %v246_v61  ;;  %v577_v2 = vpack.c.bf16 %v281_v1, %v280_v0  ;;  %v264_v3 = vld [vmem:[%s862_s3 + $0xd0] sm:$0xff]  ;;  %v265_v4 = vld [vmem:[%s862_s3 + $0xd8] sm:$0xff]  ;;  %v282_v9 = vld [vmem:[%s862_s3 + $0x160] sm:$0xff] }
  0x11   :  { %566 = vmatpush1.bf16.msra.mxu1 %v565_v30  ;;  %v549_v5 = vpack.c.bf16 %v265_v4, %v264_v3  ;;  %v248_v6 = vld [vmem:[%s862_s3 + $0x50] sm:$0xff]  ;;  %v249_v7 = vld [vmem:[%s862_s3 + $0x58] sm:$0xff]  ;;  %v283_v10 = vld [vmem:[%s862_s3 + $0x168] sm:$0xff] }
  0x12   :  { %567 = vmatprep.subr.bf16.mxu1 %v615_v24  ;;  %536 = vmatpush3.bf16.msra.mxu0 %v535_v36  ;;  %v551_v8 = vpack.c.bf16 %v249_v7, %v248_v6  ;;  %v580_v11 = vpack.c.bf16 %v283_v10, %v282_v9  ;;  %v266_v12 = vld [vmem:[%s862_s3 + $0xe0] sm:$0xff]  ;;  %v267_v13 = vld [vmem:[%s862_s3 + $0xe8] sm:$0xff]  ;;  %v284_v17 = vld [vmem:[%s862_s3 + $0x170] sm:$0xff]  ;;  %v49_v36 = vsub.s32 3, %v36_v32  ;;  %v617_v9 = vmov 1  }
  0x13   :  { %538 = vmatprep.subr.bf16.mxu0 %v537_v42  ;;  %v553_v14 = vpack.c.bf16 %v267_v13, %v266_v12  ;;  %v250_v15 = vld [vmem:[%s862_s3 + $0x60] sm:$0xff]  ;;  %v251_v16 = vld [vmem:[%s862_s3 + $0x68] sm:$0xff]  ;;  %v285_v19 = vld [vmem:[%s862_s3 + $0x178] sm:$0xff]  ;;  %592 = vset.pattern.permute.xlu0 %v617_v9 }
  0x14   :  { %v555_v18 = vpack.c.bf16 %v251_v16, %v250_v15  ;;  %v268_v20 = vld [vmem:[%s862_s3 + $0xf0] sm:$0xff]  ;;  %v269_v21 = vld [vmem:[%s862_s3 + $0xf8] sm:$0xff]  ;;  %v583_v22 = vpack.c.bf16 %v285_v19, %v284_v17  ;;  %v286_v28 = vld [vmem:[%s862_s3 + $0x180] sm:$0xff]  ;;  %593 = vset.pattern.permute.xlu1 %v617_v9  ;;  %v452_v17 = vand.u32 127, %v35_v31 }
  0x15   :  { %569 = vmatpush1.bf16.msra.mxu1 %v568_v39  ;;  %v557_v23 = vpack.c.bf16 %v269_v21, %v268_v20  ;;  %v252_v25 = vld [vmem:[%s862_s3 + $0x70] sm:$0xff]  ;;  %v253_v26 = vld [vmem:[%s862_s3 + $0x78] sm:$0xff]  ;;  %v287_v29 = vld [vmem:[%s862_s3 + $0x188] sm:$0xff] }
  0x16   :  { %570 = vmatprep.subr.bf16.mxu1 %v615_v24  ;;  %540 = vmatpush3.bf16.msra.mxu0 %v539_v45  ;;  %v559_v27 = vpack.c.bf16 %v253_v26, %v252_v25  ;;  %v586_v30 = vpack.c.bf16 %v287_v29, %v286_v28  ;;  %v33_v34 = vld [vmem:[%s864_s2] sm:$0xf]  ;;  %vm454_vm3 = vcmp.eq.s32.totalorder %v452_v17, 1  ;;  %vm453_vm4 = vcmp.eq.s32.totalorder %v452_v17, 0 }
  0x17   :  { %542 = vmatprep.subr.bf16.mxu0 %v541_v51  ;;  %v38_v37 = vrot.slane %v33_v34, %v37_v33  ;;  %v46_v39 = vrot.slane %v33_v34, %v45_v35  ;;  %v50_v40 = vrot.slane %v33_v34, %v49_v36  ;;  %v483_v3 = vld [vmem:[%s865_s4] ss:$0 sm:$0xff] }
  0x19   :  { %572 = vmatpush1.bf16.msra.mxu1 %v571_v48 }
  0x1a   :  { %573 = vmatprep.subr.bf16.mxu1 %v615_v24  ;;  %544 = vmatpush3.bf16.msra.mxu0 %v543_v54 }
  0x1b   :  { %546 = vmatprep.subr.bf16.mxu0 %v545_v60 }
  0x1d   :  { %575 = vmatpush1.bf16.msra.mxu1 %v574_v57 }
  0x1e   :  { %576 = vmatprep.subr.bf16.mxu1 %v615_v24  ;;  %548 = vmatpush3.bf16.msra.mxu0 %v547_v63 }
  0x1f   :  { %550 = vmatprep.subr.bf16.mxu0 %v549_v5 }
  0x21   :  { %578 = vmatpush1.bf16.msra.mxu1 %v577_v2 }
  0x22   :  { %579 = vmatprep.subr.bf16.mxu1 %v615_v24  ;;  %552 = vmatpush3.bf16.msra.mxu0 %v551_v8 }
  0x23   :  { %554 = vmatprep.subr.bf16.mxu0 %v553_v14 }
  0x25   :  { %581 = vmatpush1.bf16.msra.mxu1 %v580_v11 }
  0x26   :  { %582 = vmatprep.subr.bf16.mxu1 %v615_v24  ;;  %556 = vmatpush3.bf16.msra.mxu0 %v555_v18 }
  0x27   :  { %558 = vmatprep.subr.bf16.mxu0 %v557_v23 }
  0x29   :  { %584 = vmatpush1.bf16.msra.mxu1 %v583_v22 }
  0x2a   :  { %585 = vmatprep.subr.bf16.mxu1 %v615_v24  ;;  %560 = vmatpush3.bf16.msra.mxu0 %v559_v27  ;;  %v41_v24 = vsub.s32 1, %v36_v32 }
  0x2c   :  { %v42_v38 = vrot.slane %v33_v34, %v41_v24 }
  0x2d   :  { %587 = vmatpush1.bf16.msra.mxu1 %v586_v30 }
  0xde   :  { %v138_v41 = vpop.f32.mrb[0].mxu0 }
  0xdf   :  { %v139_v42 = vadd.f32 %v138_v41, %v38_v37  ;;  %v140_v43 = vpop.f32.mrb[1].mxu0  ;;  %v209_v44 = vpop.f32.mrb[0].mxu1 }
  0xe0   :  { %v141_v45 = vadd.f32 %v140_v43, %v42_v38  ;;  %v210_v46 = vadd.f32 %v209_v44, %v46_v39  ;;  %v211_v47 = vpop.f32.mrb[1].mxu1 }
  0xe1   :  { %v479_v48 = vmul.f32 -1.442695, %v139_v42  ;;  %v212_v49 = vadd.f32 %v211_v47, %v50_v40 }
  0xe2   :  { %v480_v50 = vmul.f32 -1.442695, %v141_v45  ;;  %v481_v51 = vmul.f32 -1.442695, %v210_v46 }
  0xe3   :  { %594 = vpow2.f32 %v479_v48  ;;  %v482_v52 = vmul.f32 -1.442695, %v212_v49 }
  0xe4   :  { %596 = vpow2.f32 %v480_v50 }
  0xe5   :  { %598 = vpow2.f32 %v481_v51 }
  0xe6   :  { %600 = vpow2.f32 %v482_v52 }
  0xed   :  { %v595_v53 = vpop.eup %594 }
  0xee   :  { %v597_v54 = vpop.eup %596  ;;  %v226_v55 = vadd.f32 1.0, %v595_v53 }
  0xef   :  { %v599_v56 = vpop.eup %598  ;;  %v227_v57 = vadd.f32 1.0, %v597_v54 }
  0xf0   :  { %v601_v58 = vpop.eup %600  ;;  %602 = vrcp.f32 %v226_v55  ;;  %v228_v59 = vadd.f32 1.0, %v599_v56 }
  0xf1   :  { %604 = vrcp.f32 %v227_v57  ;;  %v229_v60 = vadd.f32 1.0, %v601_v58 }
  0xf2   :  { %606 = vrcp.f32 %v228_v59 }
  0xf3   :  { %608 = vrcp.f32 %v229_v60 }
  0xfa   :  { %v603_v61 = vpop.eup %602 }
  0xfb   :  { %v605_v62 = vpop.eup %604 }
  0xfc   :  { %v607_v63 = vpop.eup %606  ;;  %363 = vmatprep.mubr.f32.mxu0 %v605_v62 }
  0xfd   :  { %v609_v0 = vpop.eup %608  ;;  %364 = vmatmul.mubr.f32.vlgmr.msra.gmra.mrb[2].mxu0 %v603_v61 }
  0xfe   :  { %484 = vmatprep.mubr.msk.f32.mxu1 %vm295_vm2, %v609_v0 }
  0xff   :  { %434 = vmatmul.mubr.f32.vlgmr.msra.gmra.mrb[2].mxu1 %v607_v63 }
 0x1d0   :  { %v518_v1 = vpop.f32.mrb[2].mxu0 }
 0x1d1   :  { %v519_v2 = vpop.f32.mrb[3].mxu0 }
 0x1d2   :  { %v520_v4 = vadd.f32 %v519_v2, %v518_v1  ;;  %v435_v5 = vpop.f32.mrb[2].mxu1 }
 0x1d3   :  { %v437_v6 = vpop.f32.mrb[3].mxu1 }
 0x1d4   :  { %v366_v7 = vadd.f32 %v520_v4, %v483_v3 }
 0x1d6   :  { %v436_v8 = vadd.f32 %v435_v5, %v366_v7 }
 0x1d8   :  { %440 = vrot.lane.b32.xlu0 %v436_v8, %s616_s13 }
 0x24a   :  { %v441_v10 = vpop.permute.xlu0 %440 }
 0x24b   :  { %v443_v11 = vsub.f32 %v436_v8, %v441_v10 }
 0x24d   :  { %v485_v12 = vmul.f32 -1.442695, %v443_v11 }
 0x24f   :  { %610 = vpow2.f32 %v485_v12 }
 0x259   :  { %v611_v13 = vpop.eup %610 }
 0x25a   :  { %v447_v14 = vadd.f32 1.0, %v611_v13 }
 0x25c   :  { %612 = vrcp.f32 %v447_v14 }
 0x266   :  { %v613_v15 = vpop.eup %612 }
 0x267   :  { %457 = vperm.xlu0 %592, %v613_v15   ;;  %v450_v16 = vsub.f32 1.0, %v613_v15 }
 0x269   :  { %463 = vperm.xlu1 %593, %v450_v16  }
 0x2e6   :  { %v458_v18 = vpop.permute.xlu0 %457 }
 0x2e7   :  { %v460_v19 = vsel %vm454_vm3, %v458_v18, 0.0 }
 0x2e8   :  { %v464_v20 = vpop.permute.xlu1 %463 }
 0x2e9   :  { %v466_v21 = vsel %vm453_vm4, %v464_v20, %v460_v19 }
 0x2ea   :  { %468 = vst.msk [vmem:[%s866_s5] sm:$0xff] %vm467_vm5, %v466_v21 }

</bundles_post_ra>
